<compile_context>
chip_gen: v7x
topology: tpu7x:2x2x1
jax: 0.10.0
libtpu: 0.0.40
codegen_flags: <defaults>
</compile_context>

<pallas_src>
import jax
import jax.numpy as jnp
from jax.experimental import pallas as pl
from jax.experimental.pallas import tpu as pltpu


def _pick_tile(total, cap, quantum):
    """Largest multiple of `quantum` that divides `total` and is <= cap.
    Falls back to the full extent, which is always a legal block size."""
    best = total
    t = quantum
    while t <= min(cap, total):
        if total % t == 0:
            best = t
        t += quantum
    return best


def _make_pairwise_z_kernel(lane_group):
    """Kernel factory; `lane_group` is the VALU accumulation width (128 when
    the column tile is a multiple of 128, else the full tile width)."""

    def kernel(xr_ref, xct_ref, sqr1_ref, sqc_ref, z_i_ref, acc_ref):
        j = pl.program_id(1)

        @pl.when(j == 0)
        def _init():
            acc_ref[...] = jnp.zeros_like(acc_ref)

        # gram = -2 <x_i, x_j>  (column operand pre-scaled by -2 and
        # pre-transposed in the wrapper -> plain (tm,D)x(D,tn) MXU matmul).
        gram = jnp.dot(xr_ref[...], xct_ref[...],
                       preferred_element_type=jnp.float32)           # (tm, tn)
        # denom = 1 + d2 = (1 + ||x_i||^2) + ||x_j||^2 - 2<x_i, x_j>
        # (+1 folded into sqr1; clamp at 1.0 <=> d2 >= 0 for cancellation).
        denom = jnp.maximum(gram + sqc_ref[...] + sqr1_ref[...], 1.0)
        q = pl.reciprocal(denom, approx=True)                        # EUP slot

        # Lane-group accumulation: pure VALU adds on aligned lane slices; the
        # expensive cross-lane reduce is deferred to the last column tile.
        acc = acc_ref[...]
        tn = q.shape[1]
        for g in range(tn // lane_group):
            acc = acc + q[:, g * lane_group:(g + 1) * lane_group]
        acc_ref[...] = acc

        @pl.when(j == pl.num_programs(1) - 1)
        def _finalize():
            # One XLU cross-lane reduce + one narrow (tm, 1) store per row block.
            z_i_ref[...] = jnp.sum(acc_ref[...], axis=1, keepdims=True)

    return kernel


def _loss_outer_kernel(neg_qii_ref, inv_z_ref, loss_ref):
    """loss[i, j] = -qii[j] / Z[i]; negation and exact reciprocal precomputed
    in the glue, so the tile body is one broadcast multiply (lane-dense store)."""
    loss_ref[...] = neg_qii_ref[...] * inv_z_ref[...]


def cauchy_loss_forward(feats, state):
    """Pallas forward of CauchyLoss.forward + functional replica of update_s.

    Returns (loss, new_state); `state` holds the CLSABase buffers (JAX is
    functional, so the buffer mutations become returned new values).
    """
    m, d = feats.shape
    b = m // 2
    assert m == 2 * b, "feats must hold 2B rows"
    assert b % 8 == 0, "B must be a multiple of 8 (TPU sublane tiling)"

    n_val = jnp.asarray(state["N"], jnp.float32)
    s_inv = jnp.asarray(state["s_inv"], jnp.float32)
    assert s_inv.shape[0] == m, \
        "torch broadcast of Z_hat (N,1) against Z_i (2B,1) requires N == 2B"
    omega = state["omega"]
    rho = state["rho"]
    alpha = state["alpha"]

    feats = feats.astype(jnp.float32)

    # ------------------ O(M*D) precompute in XLA glue ------------------
    sq = jnp.sum(feats * feats, axis=1)                     # (M,)
    sqr1 = (1.0 + sq).reshape(m, 1)                         # +1 folded into row norms
    sqc = sq.reshape(1, m)                                  # lane-oriented column norms
    cols = (-2.0) * feats.T                                 # (D, M): -2 folded, pre-transposed
    # qii[i] = 1 / (1 + ||x_i - x_{(i+B) mod 2B}||^2), exact, O(M*D)
    diff = feats - jnp.roll(feats, -b, axis=0)
    qii = 1.0 / (1.0 + jnp.sum(diff * diff, axis=1))        # (M,)

    # ------------------ pass 1: row sums z_i = sum_j q[i, j] ------------------
    # TODO(synk): for D >= ~256, cast the two Gram operands to bf16 (keep the
    # elementwise math and preferred_element_type in f32) to lift the MXU rate.
    tm = _pick_tile(b, cap=512, quantum=8)     # divides B -> row-block count 2*(B/tm) is even
    tn = _pick_tile(m, cap=512, quantum=128)   # column tile (lane axis of the q tile)
    nb_rows = m // tm
    nb_cols = m // tn
    lane_group = 128 if (tn % 128 == 0) else tn

    z_i = pl.pallas_call(
        _make_pairwise_z_kernel(lane_group),
        out_shape=jax.ShapeDtypeStruct((m, 1), jnp.float32),
        grid_spec=pltpu.PrefetchScalarGridSpec(
            num_scalar_prefetch=0,
            grid=(nb_rows, nb_cols),
            in_specs=[
                pl.BlockSpec((tm, d), lambda i, j: (i, 0)),   # row feats (j-invariant)
                pl.BlockSpec((d, tn), lambda i, j: (0, j)),   # -2 * feats^T column block
                pl.BlockSpec((tm, 1), lambda i, j: (i, 0)),   # 1 + row sq-norms
                pl.BlockSpec((1, tn), lambda i, j: (0, j)),   # column sq-norms (lane dense)
            ],
            out_specs=pl.BlockSpec((tm, 1), lambda i, j: (i, 0)),
            scratch_shapes=[pltpu.VMEM((tm, lane_group), jnp.float32)],
        ),
        compiler_params=pltpu.CompilerParams(
            dimension_semantics=("parallel", "arbitrary"),
            vmem_limit_bytes=32 * 1024 * 1024),
        cost_estimate=pl.CostEstimate(
            flops=2 * m * m * d + 4 * m * m,
            transcendentals=m * m,
            bytes_accessed=(nb_rows + 1) * m * d * 4 + (nb_rows + 3) * m * 4),
    )(feats, cols, sqr1, sqc)

    # ------- O(M) bookkeeping from the PyTorch forward (the no_grad block) -------
    momentum = jnp.where(rho < 0, n_val / (n_val + omega), rho).astype(jnp.float32)
    z_hat = s_inv.reshape(m, 1) * (jnp.float32(m - 1) / n_val)       # (M, 1)
    z = (1.0 - momentum) * z_i + momentum * z_hat                    # (M, 1)
    inv_z = 1.0 / z                                                  # exact (only M values)
    neg_qii_row = (-qii).reshape(1, m)                               # lane-dense for pass 2

    # ------- pass 2: loss[i, j] = -qii[j] / Z[i] as lane-dense streamed tiles -------
    tm2 = _pick_tile(m, cap=512, quantum=8)
    tn2 = _pick_tile(m, cap=2048, quantum=128)
    loss = pl.pallas_call(
        _loss_outer_kernel,
        out_shape=jax.ShapeDtypeStruct((m, m), jnp.float32),
        grid_spec=pltpu.PrefetchScalarGridSpec(
            num_scalar_prefetch=0,
            grid=(m // tm2, m // tn2),
            in_specs=[
                pl.BlockSpec((1, tn2), lambda i, j: (0, j)),        # -qii row vector
                pl.BlockSpec((tm2, 1), lambda i, j: (i, 0)),        # exact 1/Z column
            ],
            out_specs=pl.BlockSpec((tm2, tn2), lambda i, j: (i, j)),
        ),
        compiler_params=pltpu.CompilerParams(
            dimension_semantics=("parallel", "parallel"),
            vmem_limit_bytes=32 * 1024 * 1024),
        cost_estimate=pl.CostEstimate(
            flops=m * m,
            transcendentals=0,
            bytes_accessed=m * m * 4 + 2 * m * 4),
    )(neg_qii_row, inv_z)

    # ---------- CLSABase.update_s side-effect (functional scalar bookkeeping) ----------
    # torch's masked_fill is not in-place, so qij == q keeps its diagonal and
    # qij.sum(dim=1) == z_i exactly; the full q matrix is never needed here.
    sum_q = jnp.sum(z_i)
    bii = m
    bij = m
    xi = jnp.sum(alpha * qii) + jnp.sum((1.0 - alpha) * z_i / (bij - 1))
    omega_new = alpha * bii + (1.0 - alpha) * bij
    momentum2 = jnp.where(rho < 0, n_val / (n_val + omega_new), rho)
    weighted_sum_count = xi / omega_new
    s_inv_new = momentum2 * s_inv + (1.0 - momentum2) * n_val * weighted_sum_count

    new_state = dict(state)
    new_state.update(
        qii=jnp.mean(qii),
        qij=sum_q / jnp.float32(m * m),
        qcoeff=n_val / s_inv,          # uses s_inv *before* the update, as in torch
        xi=xi,
        omega=omega_new,
        s_inv=s_inv_new,
    )
    return loss, new_state


def reference_forward(feats, s_inv, n_val, omega, rho):
    """Plain-JAX mirror of the PyTorch forward (for a sanity check)."""
    m = feats.shape[0]
    b = m // 2
    diff = feats[:, None, :] - feats[None, :, :]
    d2 = jnp.sum(diff * diff, axis=-1)                 # torch.cdist(feats, feats)**2
    q = 1.0 / (1.0 + d2)
    idx = (jnp.arange(m) + b) % m
    qii = q[jnp.arange(m), idx]
    momentum = jnp.where(rho < 0, n_val / (n_val + omega), rho)
    z_hat = s_inv[:, None] / n_val * (m - 1)
    z_i = jnp.sum(q, axis=1, keepdims=True)
    z = (1 - momentum) * z_i + momentum * z_hat
    return -qii[None, :] / z


if __name__ == "__main__":
    key = jax.random.PRNGKey(0)
    B, D = 64, 32
    M = 2 * B
    N = M            # torch broadcast of Z_hat (N,1) vs Z_i (2B,1) requires N == 2B
    S_init = 1.0

    feats = jax.random.normal(key, (M, D), dtype=jnp.float32)

    state = {
        "N": jnp.float32(N),
        "s_inv": jnp.full((N,), float(N) ** S_init, dtype=jnp.float32),
        "alpha": jnp.float32(0.5),
        "rho": jnp.float32(-1.0),
        # nonzero omega so momentum < 1 and the in-kernel row sums z_i actually
        # influence the loss (stronger check than the freshly-initialized omega=0).
        "omega": jnp.float32(32.0),
        "xi": jnp.float32(0.0),
        "qii": jnp.float32(0.0),
        "qij": jnp.float32(0.0),
        "qcoeff": jnp.float32(0.0),
    }

    loss, new_state = cauchy_loss_forward(feats, state)
    loss = jax.block_until_ready(loss)

    ref = reference_forward(feats, state["s_inv"], state["N"],
                            state["omega"], state["rho"])

    assert loss.shape == (M, M), loss.shape
    assert bool(jnp.all(jnp.isfinite(loss)))
    max_err = float(jnp.max(jnp.abs(loss - ref)))
    assert bool(jnp.allclose(loss, ref, rtol=2e-2, atol=1e-5)), max_err
    for k in ("s_inv", "xi", "omega", "qii", "qij"):
        assert bool(jnp.all(jnp.isfinite(new_state[k]))), k

    print("KERNEL_OK")
</pallas_src>

<mosaic_0001>
module attributes {stable_mosaic.version = 11 : i64} {
  func.func @kernel(%arg0: i32, %arg1: i32, %arg2: memref<64x32xf32, #tpu.memory_space<vmem>>, %arg3: memref<32x128xf32, #tpu.memory_space<vmem>>, %arg4: memref<64x1xf32, #tpu.memory_space<vmem>>, %arg5: memref<1x128xf32, #tpu.memory_space<vmem>>, %arg6: memref<64x1xf32, #tpu.memory_space<vmem>>, %arg7: memref<64x128xf32, #tpu.memory_space<vmem>>) attributes {dimension_semantics = [#tpu.dimension_semantics<parallel>, #tpu.dimension_semantics<arbitrary>], iteration_bounds = array<i64: 2, 1>, scalar_prefetch = 0 : i64, scratch_operands = 1 : i64, tpu.core_type = #tpu.core_type<tc>, window_params = [{transform_indices = @transform_0, window_bounds = array<i64: 64, 32>}, {transform_indices = @transform_1, window_bounds = array<i64: 32, 128>}, {transform_indices = @transform_2, window_bounds = array<i64: 64, 1>}, {transform_indices = @transform_3, window_bounds = array<i64: 1, 128>}, {transform_indices = @transform_4, window_bounds = array<i64: 64, 1>}]} {
    %c0_i32 = arith.constant 0 : i32
    %0 = arith.cmpi eq, %arg1, %c0_i32 : i32
    %1 = arith.extui %0 : i1 to i32
    %c0_i32_0 = arith.constant 0 : i32
    %2 = arith.cmpi ne, %1, %c0_i32_0 : i32
    scf.if %2 {
      %cst_15 = arith.constant 0.000000e+00 : f32
      %21 = vector.broadcast %cst_15 : f32 to vector<64x128xf32>
      %c0_16 = arith.constant 0 : index
      %c0_17 = arith.constant 0 : index
      %22 = vector.load %arg7[%c0_16, %c0_17] : memref<64x128xf32, #tpu.memory_space<vmem>>, vector<64x128xf32>
      tpu.vector_store %arg7[%c0_16, %c0_17], %21 {strides = array<i32>} : memref<64x128xf32, #tpu.memory_space<vmem>>, vector<64x128xf32>,
    } else {
    }
    %c0 = arith.constant 0 : index
    %c0_1 = arith.constant 0 : index
    %3 = vector.load %arg2[%c0, %c0_1] : memref<64x32xf32, #tpu.memory_space<vmem>>, vector<64x32xf32>
    %c0_2 = arith.constant 0 : index
    %c0_3 = arith.constant 0 : index
    %4 = vector.load %arg3[%c0_2, %c0_3] : memref<32x128xf32, #tpu.memory_space<vmem>>, vector<32x128xf32>
    %cst = arith.constant dense<0.000000e+00> : vector<64x128xf32>
    %5 = tpu.matmul %3, %4, %cst {dimension_numbers = #tpu.dot_dimension_numbers<[1], [0], [0], [1], [0, 0, 1, 1], [], []>} : vector<64x32xf32>, vector<32x128xf32>, vector<64x128xf32> -> vector<64x128xf32>
    %c0_4 = arith.constant 0 : index
    %c0_5 = arith.constant 0 : index
    %6 = vector.load %arg5[%c0_4, %c0_5] : memref<1x128xf32, #tpu.memory_space<vmem>>, vector<1x128xf32>
    %7 = vector.broadcast %6 : vector<1x128xf32> to vector<64x128xf32>
    %8 = arith.addf %5, %7 : vector<64x128xf32>
    %c0_6 = arith.constant 0 : index
    %c0_7 = arith.constant 0 : index
    %9 = vector.load %arg4[%c0_6, %c0_7] : memref<64x1xf32, #tpu.memory_space<vmem>>, vector<64x1xf32>
    %10 = vector.broadcast %9 : vector<64x1xf32> to vector<64x128xf32>
    %11 = arith.addf %8, %10 : vector<64x128xf32>
    %cst_8 = arith.constant 1.000000e+00 : f32
    %12 = vector.broadcast %cst_8 : f32 to vector<64x128xf32>
    %13 = arith.maximumf %11, %12 : vector<64x128xf32>
    %14 = tpu.reciprocal %13 {approx = true} : vector<64x128xf32> -> vector<64x128xf32>
    %c0_9 = arith.constant 0 : index
    %c0_10 = arith.constant 0 : index
    %15 = vector.load %arg7[%c0_9, %c0_10] : memref<64x128xf32, #tpu.memory_space<vmem>>, vector<64x128xf32>
    %16 = arith.addf %15, %14 : vector<64x128xf32>
    %c0_11 = arith.constant 0 : index
    %c0_12 = arith.constant 0 : index
    %17 = vector.load %arg7[%c0_11, %c0_12] : memref<64x128xf32, #tpu.memory_space<vmem>>, vector<64x128xf32>
    tpu.vector_store %arg7[%c0_11, %c0_12], %16 {strides = array<i32>} : memref<64x128xf32, #tpu.memory_space<vmem>>, vector<64x128xf32>,
    %c0_i32_13 = arith.constant 0 : i32
    %18 = arith.cmpi eq, %arg1, %c0_i32_13 : i32
    %19 = arith.extui %18 : i1 to i32
    %c0_i32_14 = arith.constant 0 : i32
    %20 = arith.cmpi ne, %19, %c0_i32_14 : i32
    scf.if %20 {
      %c0_15 = arith.constant 0 : index
      %c0_16 = arith.constant 0 : index
      %21 = vector.load %arg7[%c0_15, %c0_16] : memref<64x128xf32, #tpu.memory_space<vmem>>, vector<64x128xf32>
      %cst_17 = arith.constant dense<0.000000e+00> : vector<64xf32>
      %22 = vector.multi_reduction <add>, %21, %cst_17 [1] : vector<64x128xf32> to vector<64xf32>
      %23 = vector.shape_cast %22 : vector<64xf32> to vector<64x1xf32>
      %c0_18 = arith.constant 0 : index
      %c0_19 = arith.constant 0 : index
      %24 = vector.load %arg6[%c0_18, %c0_19] : memref<64x1xf32, #tpu.memory_space<vmem>>, vector<64x1xf32>
      tpu.vector_store %arg6[%c0_18, %c0_19], %23 {strides = array<i32>} : memref<64x1xf32, #tpu.memory_space<vmem>>, vector<64x1xf32>,
    } else {
    }
    return
  }
  func.func @transform_0(%arg0: i32, %arg1: i32) -> (i32, i32) {
    %c0_i32 = arith.constant 0 : i32
    %c0_i32_0 = arith.constant 0 : i32
    return %arg0, %c0_i32 : i32, i32
  }
  func.func @transform_1(%arg0: i32, %arg1: i32) -> (i32, i32) {
    %c0_i32 = arith.constant 0 : i32
    %c0_i32_0 = arith.constant 0 : i32
    return %c0_i32, %arg1 : i32, i32
  }
  func.func @transform_2(%arg0: i32, %arg1: i32) -> (i32, i32) {
    %c0_i32 = arith.constant 0 : i32
    %c0_i32_0 = arith.constant 0 : i32
    return %arg0, %c0_i32 : i32, i32
  }
  func.func @transform_3(%arg0: i32, %arg1: i32) -> (i32, i32) {
    %c0_i32 = arith.constant 0 : i32
    %c0_i32_0 = arith.constant 0 : i32
    return %c0_i32, %arg1 : i32, i32
  }
  func.func @transform_4(%arg0: i32, %arg1: i32) -> (i32, i32) {
    %c0_i32 = arith.constant 0 : i32
    %c0_i32_0 = arith.constant 0 : i32
    return %arg0, %c0_i32 : i32, i32
  }
}

</mosaic_0001>

<bundles_post_ra>
// kernel: tpu_custom_call.1
= control target key start
LH: loop header
LB: loop body
LE: loop exit
PB: predicated region body
PF: predicated region fallthrough
CT: control target
= control target key end

     0   :  { %s824_s15 = smov 0   ;;  %s826_s16 = smov 0   ;;  %s906_s0 = inlined_call_operand.vmem [shape: f32[128,32], index: 0, kind: input, shape index: {}]   ;;  %s907_s1 = inlined_call_operand.vmem [shape: f32[32,128], index: 1, kind: input, shape index: {}]   ;;  %s908_s2 = inlined_call_operand.vmem [shape: f32[128,1], index: 2, kind: input, shape index: {}]   ;;  %s909_s3 = inlined_call_operand.vmem [shape: f32[1,128], index: 3, kind: input, shape index: {}]   ;;  %s910_s4 = inlined_call_operand.vmem [shape: f32[128,1], index: 4, kind: output, shape index: {}]  }
   0x1   :  { %s828_s17 = smov 0  }
   0x2 LB: > { %s26_s18 = sadd.s32 1, %s792_s16  ;;  %p669_p0 = scmp.ge.s32.totalorder %s796_s17, 1  ;;  %s796_s17 = sphi %s828_s17, %s14_s17   ;;  %s792_s16 = sphi %s826_s16, %s912_s16   ;;  %s788_s15 = sphi %s824_s15, %s911_s15  }
   0x3   : > { %p28_p1 = scmp.ge.s32.totalorder %s26_s18, 2  ;;  %p203_p2 = scmp.lt.s32.totalorder %s796_s17, 3 }
   0x5   : > { %s914_s18 = smov (%p28_p1, %s26_s18), 0  ;;  %p204_p3 = pnand %p669_p0, %p203_p2 }
   0x6   : > { %v286_v0 = vld [vmem:[%s907_s1] sm:$0xff] (!%p204_p3)  ;;  %v287_v1 = vld [vmem:[%s907_s1 + $0x8] sm:$0xff] (!%p204_p3)  ;;  %v288_v2 = vld [vmem:[%s907_s1 + $0x10] sm:$0xff] (!%p204_p3)  ;;  %s670_s25 = sshll.u32 (!%p204_p3), %s788_s15, 3  ;;  %v798_v5 = vmov (!%p204_p3), 0   ;;  %vm297_vm0 = vcmask (!%p204_p3), 261120  }
   0x7   : > { %207 = sbr.rel (%p204_p3) target bundleno = 408 (0x198), region = 36  ;;  %v719_v3 = vpack.c.bf16 (!%p204_p3), %v287_v1, %v286_v0  ;;  %v289_v4 = vld [vmem:[%s907_s1 + $0x18] sm:$0xff] (!%p204_p3)  ;;  %p242_p4 = scmp.lt.s32.totalorder (!%p204_p3), %s670_s25, 15  ;;  %757 = vset.pattern.permute.xlu1 (!%p204_p3), %v798_v5  ;;  %756 = vset.pattern.permute.xlu0 (!%p204_p3), %v798_v5  ;;  %v676_v28 = vld [vmem:[%s909_s3] ss:$0 sm:$0xff] (!%p204_p3)  ;;  %vm550_vm1 = vcmask (!%p204_p3), 7168  }
   0x8   : > { %v723_v6 = vpack.c.bf16 (!%p204_p3), %v289_v4, %v288_v2 }
   0x9   : > { %720 = vmatprep.subr.bf16.mxu0 (!%p204_p3), %v719_v3  ;;  %727 = vmatprep.subr.bf16.mxu1 (!%p204_p3), %v719_v3 }
   0xa   : > { %722 = vmatpush3.bf16.msra.mxu0 (!%p204_p3), %v719_v3  ;;  %729 = vmatpush3.bf16.msra.mxu1 (!%p204_p3), %v719_v3 }
   0xb   : > { %724 = vmatprep.subr.bf16.mxu0 (!%p204_p3), %v723_v6  ;;  %728 = vmatprep.subr.bf16.mxu1 (!%p204_p3), %v723_v6 }
   0xe   : > { %s916_s25 = smov (!%p242_p4, %s670_s25), 15  ;;  %726 = vmatpush3.bf16.msra.mxu0 %v723_v6  ;;  %730 = vmatpush3.bf16.msra.mxu1 %v723_v6 }
   0xf   : > { %s854_s28 = sshll.u32 %s916_s25, 3 }
  0x10   : > { %s245_s5 = scalar_lea.vmem %s906_s0, %s854_s28  ;;  %s864_s8 = scalar_lea.vmem %s908_s2, %s854_s28 }
  0x11   : > { %v278_v7 = vld [vmem:[%s245_s5] sm:$0xff]  ;;  %v279_v9 = vld [vmem:[%s245_s5 + $0x8] sm:$0xff]  ;;  %v280_v11 = vld [vmem:[%s245_s5 + $0x10] sm:$0xff]  ;;  %s264_s13 = scalar_lea.vmem %s910_s4, %s854_s28 }
  0x12   : > { %v282_v8 = vld [vmem:[%s245_s5 + $0x20] sm:$0xff]  ;;  %v283_v10 = vld [vmem:[%s245_s5 + $0x28] sm:$0xff]  ;;  %707 = vmatprep.mubr.msk.f32.mxu0 %vm297_vm0, %v278_v7  ;;  %v284_v12 = vld [vmem:[%s245_s5 + $0x30] sm:$0xff] }
  0x13   : > { %713 = vmatprep.mubr.msk.f32.mxu1 %vm297_vm0, %v282_v8  ;;  %v429_v13 = vld [vmem:[%s864_s8 + $0x10] sm:$0xff]  ;;  %708 = vmatmul.mubr.msk.f32.vlgmr.msra.gmra.mrb[0].mxu0 %vm297_vm0, %v279_v9  ;;  %v430_v14 = vld [vmem:[%s864_s8 + $0x18] sm:$0xff]  ;;  %v427_v15 = vld [vmem:[%s864_s8] sm:$0xff] }
  0x14   : > { %447 = vperm.xlu1 %757, %v429_v13   ;;  %714 = vmatmul.mubr.msk.f32.vlgmr.msra.gmra.mrb[0].mxu1 %vm297_vm0, %v283_v10  ;;  %v281_v16 = vld [vmem:[%s245_s5 + $0x18] sm:$0xff]  ;;  %v428_v18 = vld [vmem:[%s864_s8 + $0x8] sm:$0xff]  ;;  %v431_v20 = vld [vmem:[%s864_s8 + $0x20] sm:$0xff] }
  0x15   : > { %710 = vmatprep.mubr.msk.f32.mxu0 %vm297_vm0, %v280_v11  ;;  %716 = vmatprep.mubr.msk.f32.mxu1 %vm297_vm0, %v284_v12  ;;  %v285_v17 = vld [vmem:[%s245_s5 + $0x38] sm:$0xff]  ;;  %v432_v19 = vld [vmem:[%s864_s8 + $0x28] sm:$0xff]  ;;  %v433_v22 = vld [vmem:[%s864_s8 + $0x30] sm:$0xff] }
  0x16   : > { %437 = vperm.xlu0 %756, %v427_v15   ;;  %v434_v21 = vld [vmem:[%s864_s8 + $0x38] sm:$0xff] }
  0x17   : > { %711 = vmatmul.mubr.msk.f32.gmra.mrb[2].mxu0 %vm297_vm0, %v281_v16 }
  0x18   : > { %452 = vperm.xlu1 %757, %v430_v14   ;;  %717 = vmatmul.mubr.msk.f32.gmra.mrb[2].mxu1 %vm297_vm0, %v285_v17 }
  0x1a   : > { %442 = vperm.xlu0 %756, %v428_v18  }
  0x1c   : > { %462 = vperm.xlu1 %757, %v432_v19  }
  0x1e   : > { %457 = vperm.xlu0 %756, %v431_v20  }
  0x20   : > { %472 = vperm.xlu1 %757, %v434_v21  }
  0x22   : > { %467 = vperm.xlu0 %756, %v433_v22  }
  0x93   : > { %v448_v24 = vpop.permute.xlu1 %447 }
  0x95   : > { %v438_v23 = vpop.permute.xlu0 %437 }
  0x97   : > { %v453_v26 = vpop.permute.xlu1 %452 }
  0x99   : > { %v443_v25 = vpop.permute.xlu0 %442 }
  0x9b   : > { %v463_v35 = vpop.permute.xlu1 %462 }
  0x9d   : > { %v458_v27 = vpop.permute.xlu0 %457 }
  0x9f   : > { %v473_v60 = vpop.permute.xlu1 %472 }
  0xa1   : > { %v468_v40 = vpop.permute.xlu0 %467 }
  0xe6   : > { %v709_v29 = vpop.f32.mrb[0].mxu0 }
  0xe7   : > { %v715_v30 = vpop.f32.mrb[0].mxu1  ;;  %v394_v31 = vadd.f32 %v709_v29, %v676_v28  ;;  %v388_v34 = vpop.f32.mrb[1].mxu0 }
  0xe8   : > { %v414_v32 = vadd.f32 %v715_v30, %v676_v28  ;;  %v408_v33 = vpop.f32.mrb[1].mxu1  ;;  %v389_v37 = vadd.f32 %v676_v28, %v388_v34 }
  0xe9   : > { %v409_v36 = vadd.f32 %v676_v28, %v408_v33  ;;  %v476_v38 = vadd.f32 %v443_v25, %v394_v31 }
  0xea   : > { %v480_v39 = vadd.f32 %v463_v35, %v414_v32  ;;  %v475_v42 = vadd.f32 %v438_v23, %v389_v37  ;;  %v712_v43 = vpop.f32.mrb[2].mxu0 }
  0xeb   : > { %v479_v41 = vadd.f32 %v458_v27, %v409_v36  ;;  %v718_v44 = vpop.f32.mrb[2].mxu1  ;;  %v484_v45 = vmax.f32 %v476_v38, 1.0  ;;  %v404_v47 = vadd.f32 %v712_v43, %v676_v28  ;;  %v398_v48 = vpop.f32.mrb[3].mxu0 }
  0xec   : > { %v488_v46 = vmax.f32 %v480_v39, 1.0  ;;  %v418_v49 = vpop.f32.mrb[3].mxu1  ;;  %v483_v50 = vmax.f32 %v475_v42, 1.0  ;;  %v399_v54 = vadd.f32 %v676_v28, %v398_v48  ;;  %v424_v58 = vadd.f32 %v718_v44, %v676_v28 }
  0xed   : > { %v419_v51 = vadd.f32 %v676_v28, %v418_v49  ;;  %758 = vrcp.f32 %v484_v45  ;;  %v487_v52 = vmax.f32 %v479_v41, 1.0  ;;  %v478_v53 = vadd.f32 %v453_v26, %v404_v47 }
  0xee   : > { %760 = vrcp.f32 %v488_v46  ;;  %v477_v59 = vadd.f32 %v448_v24, %v399_v54  ;;  %v482_v61 = vadd.f32 %v473_v60, %v424_v58 }
  0xef   : > { %v481_v55 = vadd.f32 %v468_v40, %v419_v51  ;;  %762 = vrcp.f32 %v483_v50  ;;  %v486_v57 = vmax.f32 %v478_v53, 1.0 }
  0xf0   : > { %764 = vrcp.f32 %v487_v52  ;;  %v485_v62 = vmax.f32 %v477_v59, 1.0  ;;  %v490_v2 = vmax.f32 %v482_v61, 1.0 }
  0xf1   : > { %v489_v56 = vmax.f32 %v481_v55, 1.0 }
  0xf3   : > { %766 = vrcp.f32 %v489_v56 }
  0xf4   : > { %768 = vrcp.f32 %v486_v57 }
  0xf5   : > { %770 = vrcp.f32 %v485_v62 }
  0xf6   : > { %772 = vrcp.f32 %v490_v2 }
  0xf7   : > { %v759_v63 = vpop.eup %758 }
  0xf8   : > { %v761_v0 = vpop.eup %760  ;;  %536 = vadd.xlane.f32.xlu1 %v759_v63 }
  0xf9   : > { %544 = vadd.xlane.f32.xlu0 %v761_v0  ;;  %v763_v1 = vpop.eup %762 }
  0xfa   : > { %v765_v3 = vpop.eup %764 }
  0xfc   : > { %542 = vadd.xlane.f32.xlu1 %v765_v3 }
  0xfd   : > { %534 = vadd.xlane.f32.xlu0 %v763_v1  ;;  %v767_v4 = vpop.eup %766 }
  0xfe   : > { %v769_v5 = vpop.eup %768 }
  0xff   : > { %v771_v6 = vpop.eup %770 }
 0x100   : > { %546 = vadd.xlane.f32.xlu1 %v767_v4  ;;  %v773_v7 = vpop.eup %772 }
 0x101   : > { %540 = vadd.xlane.f32.xlu0 %v769_v5 }
 0x105   : > { %538 = vadd.xlane.f32.xlu0 %v771_v6 }
 0x109   : > { %548 = vadd.xlane.f32.xlu0 %v773_v7 }
 0x185   : > { %v537_v8 = vpop.xlane.xlu1 %536 }
 0x186   : > { %v545_v9 = vpop.xlane.xlu0 %544  ;;  %552 = vst.msk [vmem:[%s264_s13 + $0x8] sm:$0xff] %vm550_vm1, %v537_v8 }
 0x187   : > { %556 = vst.msk [vmem:[%s264_s13 + $0x28] sm:$0xff] %vm550_vm1, %v545_v9 }
 0x189   : > { %v543_v10 = vpop.xlane.xlu1 %542 }
 0x18a   : > { %555 = vst.msk [vmem:[%s264_s13 + $0x20] sm:$0xff] %vm550_vm1, %v543_v10  ;;  %v535_v11 = vpop.xlane.xlu0 %534 }
 0x18b   : > { %551 = vst.msk [vmem:[%s264_s13] sm:$0xff] %vm550_vm1, %v535_v11 }
 0x18d   : > { %v547_v12 = vpop.xlane.xlu1 %546 }
 0x18e   : > { %557 = vst.msk [vmem:[%s264_s13 + $0x30] sm:$0xff] %vm550_vm1, %v547_v12  ;;  %v541_v13 = vpop.xlane.xlu0 %540 }
 0x18f   : > { %554 = vst.msk [vmem:[%s264_s13 + $0x18] sm:$0xff] %vm550_vm1, %v541_v13 }
 0x192   : > { %v539_v14 = vpop.xlane.xlu0 %538 }
 0x193   : > { %553 = vst.msk [vmem:[%s264_s13 + $0x10] sm:$0xff] %vm550_vm1, %v539_v14 }
 0x196   : > { %v549_v15 = vpop.xlane.xlu0 %548 }
 0x197   : > { %558 = vst.msk [vmem:[%s264_s13 + $0x38] sm:$0xff] %vm550_vm1, %v549_v15 }
 0x198 PF: > { %s14_s17 = sadd.s32 1, %s796_s17   ;;  %s911_s15 = smov %s792_s16 }
 0x199   : > { %p11_p5 = scmp.ge.s32.totalorder %s14_s17, 4   ;;  %s912_s16 = smov %s914_s18 }
 0x19b   :  { %13 = sbr.rel (!%p11_p5) target bundleno = 2 (0x2), region = 83 }

</bundles_post_ra>
